<compile_context>
chip_gen: v6e
topology: v6e:2x2x1
jax: 0.10.0
libtpu: 0.0.40
codegen_flags: <defaults>
</compile_context>

<pallas_src>
import functools

import jax
import jax.numpy as jnp
from jax.experimental import pallas as pl
from jax.experimental.pallas import tpu as pltpu

LANE = 128                 # lane width / hidden-dim padding
LOG_STD_MIN = -20.0
LOG_STD_MAX = 2.0

# Row layout of the packed weight slab (all offsets 16-sublane aligned).
ROW_W2 = 0                 # [0, 128)        : W2 (HxH in top-left, zero-padded)
ROW_HEAD = LANE            # [128, 256)      : [Wm | Wl | 0] fused head
ROW_BIAS = 2 * LANE        # [256, 272)      : row0=b1, row1=b2, row2=[bm|bl|0]
ROW_W1 = 2 * LANE + 16     # [272, 272+S)    : W1 (zero-padded to 128 out lanes)


def _round_up(x, m):
    return ((x + m - 1) // m) * m


def _gaussian_policy_kernel(x_ref, w_ref, out_ref, *, state_dim, action_dim):
    """Fused trunk (2x linear+relu) + fused mean/log_std head.

    x_ref   : (bt, S)            f32
    w_ref   : (272 + S, 128)     bf16  packed weights + biases (see ROW_* above)
    out_ref : (bt, 2*A)          f32   [mean | clamp(log_std)]
    """
    S = state_dim
    A = action_dim
    x = x_ref[...].astype(jnp.bfloat16)

    w2 = w_ref[ROW_W2:ROW_W2 + LANE, :]          # (128, 128)
    wh = w_ref[ROW_HEAD:ROW_HEAD + LANE, :]      # (128, 128)
    bias = w_ref[ROW_BIAS:ROW_BIAS + 16, :].astype(jnp.float32)
    w1 = w_ref[ROW_W1:ROW_W1 + S, :]             # (S, 128)

    b1 = bias[0:1, :]
    b2 = bias[1:2, :]
    bh = bias[2:3, :]

    # linear1 + relu (padded lanes stay exactly 0: weight/bias pads are 0)
    h1 = jnp.dot(x, w1, preferred_element_type=jnp.float32) + b1
    h1 = jnp.maximum(h1, 0.0)

    # linear2 + relu
    h2 = jnp.dot(h1.astype(jnp.bfloat16), w2, preferred_element_type=jnp.float32) + b2
    h2 = jnp.maximum(h2, 0.0)

    # fused mean/log_std head: one matmul; clamp only the log_std columns
    head = jnp.dot(h2.astype(jnp.bfloat16), wh, preferred_element_type=jnp.float32) + bh
    head = head[:, :2 * A]                                    # (bt, 2A)
    col = jax.lax.broadcasted_iota(jnp.int32, head.shape, 1)
    clamped = jnp.clip(head, LOG_STD_MIN, LOG_STD_MAX)
    out = jnp.where(col < A, head, clamped)                   # cols < A: mean (unclamped)

    out_ref[...] = out.astype(out_ref.dtype)


def pack_params(params):
    """Pack all weights + biases into one bf16 slab.

    Rows: [0:128)      W2 (zero-padded HxH)
          [128:256)    [Wm | Wl | 0] fused head
          [256:272)    biases: row 256=b1, 257=b2, 258=[bm|bl|0]
          [272:272+S)  W1 (zero-padded to 128 output lanes)
    Putting the 128-row blocks and the bias block first keeps every kernel
    slice 16-sublane aligned for arbitrary state_dim.
    """
    w1, w2 = params["w1"], params["w2"]
    wm, wl = params["wm"], params["wl"]
    S, H = w1.shape
    A = wm.shape[1]
    assert H <= LANE and 2 * A <= LANE, "hidden_dim must be <= 128 and 2*action_dim <= 128"

    w2p = jnp.zeros((LANE, LANE), jnp.float32).at[:H, :H].set(w2)
    whp = (jnp.zeros((LANE, LANE), jnp.float32)
           .at[:H, :A].set(wm)
           .at[:H, A:2 * A].set(wl))
    biasp = jnp.zeros((16, LANE), jnp.float32)
    biasp = biasp.at[0, :H].set(params["b1"][0])
    biasp = biasp.at[1, :H].set(params["b2"][0])
    biasp = biasp.at[2, :A].set(params["bm"][0])
    biasp = biasp.at[2, A:2 * A].set(params["bl"][0])
    w1p = jnp.zeros((S, LANE), jnp.float32).at[:, :H].set(w1)

    w_packed = jnp.concatenate([w2p, whp, biasp, w1p], axis=0).astype(jnp.bfloat16)
    return w_packed, S, A


def gaussian_policy_forward(state, w_packed, state_dim, action_dim, *,
                            batch_tile=4096):
    """Returns (mean, log_std), each (B, action_dim) f32."""
    B = state.shape[0]
    out_w = 2 * action_dim
    batch_tile = max(8, _round_up(batch_tile, 8))

    if B <= 512:
        # Small batch: single full block (legal even when B % 8 != 0).
        bt = B
    else:
        # Split into >= 2 blocks so both v7x TensorCores get work, capped at
        # batch_tile to amortize the ~0.35us/step overhead; multiple of 8.
        bt = min(batch_tile, _round_up(pl.cdiv(B, 2), 8))
    grid = (pl.cdiv(B, bt),)

    kernel = functools.partial(
        _gaussian_policy_kernel, state_dim=state_dim, action_dim=action_dim)

    out = pl.pallas_call(
        kernel,
        out_shape=jax.ShapeDtypeStruct((B, out_w), jnp.float32),
        grid=grid,
        in_specs=[
            pl.BlockSpec((bt, state_dim), lambda i: (i, 0)),      # state tile
            pl.BlockSpec(w_packed.shape, lambda i: (0, 0)),       # weights resident
        ],
        out_specs=pl.BlockSpec((bt, out_w), lambda i: (i, 0)),    # narrow output
        compiler_params=pltpu.CompilerParams(
            dimension_semantics=("parallel",),
            vmem_limit_bytes=48 * 1024 * 1024),
    )(state, w_packed)

    mean = out[:, :action_dim]
    log_std = out[:, action_dim:]
    return mean, log_std


def init_params(key, state_dim, action_dim, hidden_dim=64):
    """nn.Linear-style init: U(-1/sqrt(fan_in), +1/sqrt(fan_in)).
    Weights stored as (in, out) so forward is x @ W + b."""
    ks = jax.random.split(key, 8)

    def uniform(k, shape, fan_in):
        bound = 1.0 / jnp.sqrt(fan_in)
        return jax.random.uniform(k, shape, jnp.float32, -bound, bound)

    return {
        "w1": uniform(ks[0], (state_dim, hidden_dim), state_dim),
        "b1": uniform(ks[1], (1, hidden_dim), state_dim),
        "w2": uniform(ks[2], (hidden_dim, hidden_dim), hidden_dim),
        "b2": uniform(ks[3], (1, hidden_dim), hidden_dim),
        "wm": uniform(ks[4], (hidden_dim, action_dim), hidden_dim),
        "bm": uniform(ks[5], (1, action_dim), hidden_dim),
        "wl": uniform(ks[6], (hidden_dim, action_dim), hidden_dim),
        "bl": uniform(ks[7], (1, action_dim), hidden_dim),
    }


def reference_forward(state, params):
    """Pure-JAX f32 reference of the PyTorch forward."""
    h1 = jnp.maximum(state @ params["w1"] + params["b1"], 0.0)
    h2 = jnp.maximum(h1 @ params["w2"] + params["b2"], 0.0)
    mean = h2 @ params["wm"] + params["bm"]
    log_std = jnp.clip(h2 @ params["wl"] + params["bl"], LOG_STD_MIN, LOG_STD_MAX)
    return mean, log_std


if __name__ == "__main__":
    key = jax.random.PRNGKey(0)
    k_param, k_state = jax.random.split(key)

    batch = 8
    state_dim = 16
    action_dim = 4
    hidden_dim = 64

    params = init_params(k_param, state_dim, action_dim, hidden_dim)
    state = jax.random.normal(k_state, (batch, state_dim), jnp.float32)

    w_packed, S, A = pack_params(params)

    mean, log_std = gaussian_policy_forward(state, w_packed, S, A)
    jax.block_until_ready((mean, log_std))

    ref_mean, ref_log_std = reference_forward(state, params)
    assert mean.shape == (batch, action_dim)
    assert log_std.shape == (batch, action_dim)
    # bf16 matmul operands / biases with f32 accumulation -> loosened tolerance
    assert jnp.allclose(mean, ref_mean, atol=3e-2, rtol=3e-2)
    assert jnp.allclose(log_std, ref_log_std, atol=3e-2, rtol=3e-2)

    # TODO(synk): `sample()` (rsample + softplus + log_prob) is stochastic glue
    # outside the forward hot path; only forward() is implemented in-kernel.
    print("KERNEL_OK")
</pallas_src>

<mosaic_0001>
module attributes {stable_mosaic.version = 11 : i64} {
  func.func @_gaussian_policy_kernel(%arg0: i32, %arg1: memref<8x16xf32, #tpu.memory_space<vmem>>, %arg2: memref<288x128xbf16, #tpu.memory_space<vmem>>, %arg3: memref<8x8xf32, #tpu.memory_space<vmem>>) attributes {dimension_semantics = [#tpu.dimension_semantics<parallel>], iteration_bounds = array<i64: 1>, scalar_prefetch = 0 : i64, scratch_operands = 0 : i64, tpu.core_type = #tpu.core_type<tc>, window_params = [{transform_indices = @transform_0, window_bounds = array<i64: 8, 16>}, {pipeline_mode = #tpu.pipeline_mode<synchronous>, transform_indices = @transform_1, window_bounds = array<i64: 288, 128>}, {transform_indices = @transform_2, window_bounds = array<i64: 8, 8>}]} {
    %c0 = arith.constant 0 : index
    %c0_0 = arith.constant 0 : index
    %0 = vector.load %arg1[%c0, %c0_0] : memref<8x16xf32, #tpu.memory_space<vmem>>, vector<8x16xf32>
    %1 = arith.truncf %0 : vector<8x16xf32> to vector<8x16xbf16>
    %c0_1 = arith.constant 0 : index
    %c0_2 = arith.constant 0 : index
    %2 = vector.load %arg2[%c0_1, %c0_2] : memref<288x128xbf16, #tpu.memory_space<vmem>>, vector<128x128xbf16>
    %c128 = arith.constant 128 : index
    %c0_3 = arith.constant 0 : index
    %3 = vector.load %arg2[%c128, %c0_3] : memref<288x128xbf16, #tpu.memory_space<vmem>>, vector<128x128xbf16>
    %c256 = arith.constant 256 : index
    %c0_4 = arith.constant 0 : index
    %4 = vector.load %arg2[%c256, %c0_4] : memref<288x128xbf16, #tpu.memory_space<vmem>>, vector<16x128xbf16>
    %5 = arith.extf %4 : vector<16x128xbf16> to vector<16x128xf32>
    %c272 = arith.constant 272 : index
    %c0_5 = arith.constant 0 : index
    %6 = vector.load %arg2[%c272, %c0_5] : memref<288x128xbf16, #tpu.memory_space<vmem>>, vector<16x128xbf16>
    %7 = vector.extract_strided_slice %5 {offsets = [0, 0], sizes = [1, 128], strides = [1, 1]} : vector<16x128xf32> to vector<1x128xf32>
    %8 = vector.extract_strided_slice %5 {offsets = [1, 0], sizes = [1, 128], strides = [1, 1]} : vector<16x128xf32> to vector<1x128xf32>
    %9 = vector.extract_strided_slice %5 {offsets = [2, 0], sizes = [1, 128], strides = [1, 1]} : vector<16x128xf32> to vector<1x128xf32>
    %cst = arith.constant dense<0.000000e+00> : vector<8x128xf32>
    %10 = tpu.matmul %1, %6, %cst {dimension_numbers = #tpu.dot_dimension_numbers<[1], [0], [0], [1], [0, 0, 1, 1], [], []>} : vector<8x16xbf16>, vector<16x128xbf16>, vector<8x128xf32> -> vector<8x128xf32>
    %11 = vector.broadcast %7 : vector<1x128xf32> to vector<8x128xf32>
    %12 = arith.addf %10, %11 : vector<8x128xf32>
    %cst_6 = arith.constant 0.000000e+00 : f32
    %13 = vector.broadcast %cst_6 : f32 to vector<8x128xf32>
    %14 = arith.maximumf %12, %13 : vector<8x128xf32>
    %15 = arith.truncf %14 : vector<8x128xf32> to vector<8x128xbf16>
    %cst_7 = arith.constant dense<0.000000e+00> : vector<8x128xf32>
    %16 = tpu.matmul %15, %2, %cst_7 {dimension_numbers = #tpu.dot_dimension_numbers<[1], [0], [0], [1], [0, 0, 1, 1], [], []>} : vector<8x128xbf16>, vector<128x128xbf16>, vector<8x128xf32> -> vector<8x128xf32>
    %17 = vector.broadcast %8 : vector<1x128xf32> to vector<8x128xf32>
    %18 = arith.addf %16, %17 : vector<8x128xf32>
    %cst_8 = arith.constant 0.000000e+00 : f32
    %19 = vector.broadcast %cst_8 : f32 to vector<8x128xf32>
    %20 = arith.maximumf %18, %19 : vector<8x128xf32>
    %21 = arith.truncf %20 : vector<8x128xf32> to vector<8x128xbf16>
    %cst_9 = arith.constant dense<0.000000e+00> : vector<8x128xf32>
    %22 = tpu.matmul %21, %3, %cst_9 {dimension_numbers = #tpu.dot_dimension_numbers<[1], [0], [0], [1], [0, 0, 1, 1], [], []>} : vector<8x128xbf16>, vector<128x128xbf16>, vector<8x128xf32> -> vector<8x128xf32>
    %23 = vector.broadcast %9 : vector<1x128xf32> to vector<8x128xf32>
    %24 = arith.addf %22, %23 : vector<8x128xf32>
    %25 = vector.extract_strided_slice %24 {offsets = [0, 0], sizes = [8, 8], strides = [1, 1]} : vector<8x128xf32> to vector<8x8xf32>
    %26 = tpu.iota {dimensions = array<i32: 1>} : vector<8x8xi32>
    %cst_10 = arith.constant -2.000000e+01 : f32
    %cst_11 = arith.constant 2.000000e+00 : f32
    %27 = vector.broadcast %cst_10 : f32 to vector<8x8xf32>
    %28 = arith.maximumf %27, %25 : vector<8x8xf32>
    %29 = vector.broadcast %cst_11 : f32 to vector<8x8xf32>
    %30 = arith.minimumf %29, %28 : vector<8x8xf32>
    %c4_i32 = arith.constant 4 : i32
    %31 = vector.broadcast %c4_i32 : i32 to vector<8x8xi32>
    %32 = arith.cmpi slt, %26, %31 : vector<8x8xi32>
    %33 = arith.select %32, %25, %30 : vector<8x8xi1>, vector<8x8xf32>
    %c0_12 = arith.constant 0 : index
    %c0_13 = arith.constant 0 : index
    %34 = vector.load %arg3[%c0_12, %c0_13] : memref<8x8xf32, #tpu.memory_space<vmem>>, vector<8x8xf32>
    tpu.vector_store %arg3[%c0_12, %c0_13], %33 {strides = array<i32>} : memref<8x8xf32, #tpu.memory_space<vmem>>, vector<8x8xf32>,
    return
  }
  func.func @transform_0(%arg0: i32) -> (i32, i32) {
    %c0_i32 = arith.constant 0 : i32
    %c0_i32_0 = arith.constant 0 : i32
    return %arg0, %c0_i32 : i32, i32
  }
  func.func @transform_1(%arg0: i32) -> (i32, i32) {
    %c0_i32 = arith.constant 0 : i32
    %c0_i32_0 = arith.constant 0 : i32
    %c0_i32_1 = arith.constant 0 : i32
    return %c0_i32, %c0_i32_0 : i32, i32
  }
  func.func @transform_2(%arg0: i32) -> (i32, i32) {
    %c0_i32 = arith.constant 0 : i32
    %c0_i32_0 = arith.constant 0 : i32
    return %arg0, %c0_i32 : i32, i32
  }
}

</mosaic_0001>

<bundles_post_ra>
// kernel: tpu_custom_call.1
= control target key start
LH: loop header
LB: loop body
LE: loop exit
PB: predicated region body
PF: predicated region fallthrough
CT: control target
= control target key end

     0   :  { %7 = vsyncpa [#allocation3], 0  ;;  %s568_s0 = inlined_call_operand.hbm [shape: f32[8,16], index: 0, kind: input, shape index: {}]   ;;  %s569_s1 = inlined_call_operand.hbm [shape: bf16[288,128], index: 1, kind: input, shape index: {}]   ;;  %s570_s2 = inlined_call_operand.hbm [shape: f32[8,8], index: 2, kind: output, shape index: {}]  }
   0x1   :  { %8 = vsyncpa [#allocation6], 0 }
   0x2   :  { %9 = vsyncpa [#allocation4], 0  ;;  %s517_s9 = smov [#allocation2]   ;;  %s518_s11 = smov [#allocation5]  }
   0x3   :  { %s16_s10 = sshll.u32 %s517_s9, 4  ;;  %s25_s12 = sshll.u32 %s518_s11, 4  ;;  %s17_s10 = int_to_ptr.vmem [resolvable:$true] %s16_s10  ;;  %s26_s12 = int_to_ptr.vmem [resolvable:$true] %s25_s12 }
   0x4   :  { %s459_s13 = scalar_lea.vmem %s17_s10, 128  ;;  %p464_p1 = scmp.lt.s32.totalorder %s17_s10, %s17_s10 }
   0x5   :  { %p460_p0 = scmp.ne.s32.totalorder %s17_s10, %s459_s13  ;;  %p465_p2 = scmp.lt.s32.totalorder %s459_s13, %s459_s13 }
   0x7   :  { %p466_p3 = por %p465_p2, %p464_p1 }
   0x9   :  { %p467_p4 = pnand %p466_p3, %p460_p0 }
   0xb   :  { %470 = shalt.err (!%p467_p4)
}
   0xc   :  { %19 = dma.hbm_to_vmem [thread:$0]  %s568_s0, 128, %s17_s10, [#allocation3]  }
   0xd   :  { %s479_s16 = scalar_lea.vmem %s26_s12, 2304  ;;  %p484_p6 = scmp.lt.s32.totalorder %s26_s12, %s26_s12 }
   0xe   :  { %p480_p5 = scmp.ne.s32.totalorder %s26_s12, %s479_s16  ;;  %p485_p7 = scmp.lt.s32.totalorder %s479_s16, %s479_s16 }
  0x10   :  { %p486_p8 = por %p485_p7, %p484_p6 }
  0x12   :  { %p487_p9 = pnand %p486_p8, %p480_p5 }
  0x14   :  { %490 = shalt.err (!%p487_p9)
}
  0x15   :  { %s519_s17 = smov 64   ;;  %s520_s18 = smov 4  }
  0x16   :  { %31 = dma.hbm_to_vmem [thread:$0]  %s569_s1, 2304, %s26_s12, [#allocation6], %s519_s17, %s519_s17, %s520_s18  }
  0x17   :  { %511 = dma.done.wait [#allocation3], 128  }
  0x18   :  { %512 = vsyncadd [#allocation3], 4294967168 }
  0x19   :  { %513 = dma.done.wait [#allocation6], 2304  }
  0x1a   :  { %514 = vsyncadd [#allocation6], 4294964992  ;;  %v521_v0 = vmov 0.0   ;;  %vm522_vm0 = vmmov 0   ;;  %v434_v1 = vld [vmem:[#allocation5 + $0x88] sm:$0xff]   ;;  %v39_v2 = vld [vmem:[#allocation2] sm:$0xff]  ;;  %v77_v18 = vlaneseq }
  0x1b   :  { %381 = vmatprep.subr.bf16.mxu0 %v521_v0  ;;  %383 = vmatprep.mubr.msk.bf16.mxu0 %vm522_vm0, %v521_v0  ;;  %v40_v3 = vpack.c.bf16 %v39_v2, %v39_v2  ;;  %vm87_vm1 = vcmask 130048   ;;  %v435_v4 = vld [vmem:[#allocation5 + $0x38] sm:$0xff]   ;;  %v436_v5 = vld [vmem:[#allocation5 + $0x30] sm:$0xff]   ;;  %v437_v6 = vld [vmem:[#allocation5 + $0x28] sm:$0xff]   ;;  %s523_s0 = smov [#allocation7]   ;;  %vm325_vm3 = vcmask 64512  }
  0x1c   :  { %387 = vmatprep.subr.bf16.mxu1 %v521_v0  ;;  %403 = vmatprep.mubr.msk.bf16.mxu1 %vm522_vm0, %v521_v0  ;;  %v438_v7 = vld [vmem:[#allocation5 + $0x20] sm:$0xff]   ;;  %v439_v8 = vld [vmem:[#allocation5 + $0x18] sm:$0xff]   ;;  %v440_v9 = vld [vmem:[#allocation5 + $0x10] sm:$0xff]   ;;  %v78_v19 = vshrl.u32 %v77_v18, 7  ;;  %v320_v45 = vand.u32 127, %v77_v18  ;;  %s333_s1 = sshll.u32 %s523_s0, 4  ;;  %s334_s1 = int_to_ptr.vmem [resolvable:$true] %s333_s1 }
  0x1d   :  { %382 = vmatpush3.bf16.msra.mxu0 %v434_v1  ;;  %388 = vmatpush3.bf16.msra.mxu1 %v435_v4  ;;  %v441_v10 = vld [vmem:[#allocation5 + $0x8] sm:$0xff]   ;;  %v442_v11 = vld [vmem:[#allocation5] sm:$0xff]   ;;  %v443_v12 = vld [vmem:[#allocation5 + $0x78] sm:$0xff]   ;;  %s491_s21 = scalar_lea.vmem %s334_s1, 128  ;;  %p496_p11 = scmp.lt.s32.totalorder %s334_s1, %s334_s1 }
  0x1e   :  { %407 = vmatprep.subr.bf16.mxu0 %v521_v0  ;;  %389 = vmatprep.subr.bf16.mxu1 %v521_v0  ;;  %v444_v13 = vld [vmem:[#allocation5 + $0x70] sm:$0xff]   ;;  %v445_v14 = vld [vmem:[#allocation5 + $0x68] sm:$0xff]   ;;  %v446_v15 = vld [vmem:[#allocation5 + $0x60] sm:$0xff]   ;;  %v79_v22 = vsub.s32 0, %v78_v19  ;;  %v135_v33 = vsub.s32 1, %v78_v19  ;;  %v229_v42 = vsub.s32 2, %v78_v19  ;;  %p492_p10 = scmp.ne.s32.totalorder %s334_s1, %s491_s21  ;;  %p497_p12 = scmp.lt.s32.totalorder %s491_s21, %s491_s21 }
  0x1f   :  { %v447_v16 = vld [vmem:[#allocation5 + $0x58] sm:$0xff]   ;;  %v448_v17 = vld [vmem:[#allocation5 + $0x50] sm:$0xff]   ;;  %v73_v20 = vld [vmem:[#allocation5 + $0x80] sm:$0xf]  ;;  %vm323_vm2 = vcmp.lt.s32.totalorder %v320_v45, 4 }
  0x20   :  { %384 = vmatmul.mubr.msk.bf16.vlgmr.msra.gmra.mxu0 %vm87_vm1, %v40_v3  ;;  %v74_v21 = vunpack.c.l.bf16 %v73_v20  ;;  %v449_v31 = vld [vmem:[#allocation5 + $0x48] sm:$0xff]   ;;  %v450_v32 = vld [vmem:[#allocation5 + $0x40] sm:$0xff]   ;;  %p498_p13 = por %p497_p12, %p496_p11 }
  0x21   :  { %423 = vmatprep.mubr.msk.bf16.mxu0 %vm522_vm0, %v521_v0  ;;  %390 = vmatpush3.bf16.msra.mxu1 %v436_v5 }
  0x22   :  { %391 = vmatprep.subr.bf16.mxu1 %v521_v0  ;;  %408 = vmatpush3.bf16.msra.mxu0 %v443_v12  ;;  %v80_v23 = vrot.slane %v74_v21, %v79_v22  ;;  %v136_v34 = vrot.slane %v74_v21, %v135_v33  ;;  %v230_v43 = vrot.slane %v74_v21, %v229_v42  ;;  %p499_p0 = pnand %p498_p13, %p492_p10 }
  0x23   :  { %409 = vmatprep.subr.bf16.mxu0 %v521_v0 }
  0x25   :  { %392 = vmatpush3.bf16.msra.mxu1 %v437_v6 }
  0x26   :  { %393 = vmatprep.subr.bf16.mxu1 %v521_v0  ;;  %410 = vmatpush3.bf16.msra.mxu0 %v444_v13 }
  0x27   :  { %411 = vmatprep.subr.bf16.mxu0 %v521_v0 }
  0x29   :  { %394 = vmatpush3.bf16.msra.mxu1 %v438_v7 }
  0x2a   :  { %395 = vmatprep.subr.bf16.mxu1 %v521_v0  ;;  %412 = vmatpush3.bf16.msra.mxu0 %v445_v14 }
  0x2b   :  { %413 = vmatprep.subr.bf16.mxu0 %v521_v0 }
  0x2d   :  { %396 = vmatpush3.bf16.msra.mxu1 %v439_v8 }
  0x2e   :  { %397 = vmatprep.subr.bf16.mxu1 %v521_v0  ;;  %414 = vmatpush3.bf16.msra.mxu0 %v446_v15 }
  0x2f   :  { %415 = vmatprep.subr.bf16.mxu0 %v521_v0 }
  0x31   :  { %398 = vmatpush3.bf16.msra.mxu1 %v440_v9 }
  0x32   :  { %399 = vmatprep.subr.bf16.mxu1 %v521_v0  ;;  %416 = vmatpush3.bf16.msra.mxu0 %v447_v16 }
  0x33   :  { %417 = vmatprep.subr.bf16.mxu0 %v521_v0 }
  0x35   :  { %400 = vmatpush3.bf16.msra.mxu1 %v441_v10 }
  0x36   :  { %401 = vmatprep.subr.bf16.mxu1 %v521_v0  ;;  %418 = vmatpush3.bf16.msra.mxu0 %v448_v17 }
  0x37   :  { %419 = vmatprep.subr.bf16.mxu0 %v521_v0 }
  0x39   :  { %402 = vmatpush3.bf16.msra.mxu1 %v442_v11 }
  0x3a   :  { %420 = vmatpush3.bf16.msra.mxu0 %v449_v31 }
  0x3b   :  { %421 = vmatprep.subr.bf16.mxu0 %v521_v0 }
  0x3e   :  { %422 = vmatpush3.bf16.msra.mxu0 %v450_v32 }
  0xe0   :  { %v125_v24 = vpop.f32.mrf.mxu0 }
  0xe1   :  { %v126_v25 = vadd.f32 %v125_v24, %v80_v23 }
  0xe2   :  { %v385_v26 = vpop.f32.mrf.mxu0 }
  0xe3   :  { %v131_v27 = vmax.f32 %v126_v25, 0.0 }
  0xe4   :  { %v128_v28 = vpop.f32.mrf.mxu0 }
  0xe5   :  { %v132_v29 = vpack.c.bf16 %v131_v27, %v131_v27 }
  0xe6   :  { %v386_v30 = vpop.f32.mrf.mxu0 }
  0xe7   :  { %404 = vmatmul.mubr.bf16.vlgmr.msra.gmra.mxu1 %v132_v29 }
 0x1a7   :  { %v219_v35 = vpop.f32.mrf.mxu1 }
 0x1a8   :  { %v220_v36 = vadd.f32 %v219_v35, %v136_v34 }
 0x1a9   :  { %v405_v37 = vpop.f32.mrf.mxu1 }
 0x1aa   :  { %v225_v38 = vmax.f32 %v220_v36, 0.0 }
 0x1ab   :  { %v222_v39 = vpop.f32.mrf.mxu1 }
 0x1ac   :  { %v226_v40 = vpack.c.bf16 %v225_v38, %v225_v38 }
 0x1ad   :  { %v406_v41 = vpop.f32.mrf.mxu1 }
 0x1ae   :  { %424 = vmatmul.mubr.bf16.vlgmr.msra.gmra.mxu0 %v226_v40 }
 0x26e   :  { %v313_v44 = vpop.f32.mrf.mxu0 }
 0x26f   :  { %v314_v46 = vadd.f32 %v313_v44, %v230_v43 }
 0x270   :  { %v425_v47 = vpop.f32.mrf.mxu0 }
 0x271   :  { %v321_v48 = vmax.f32 %v314_v46, -20.0 }
 0x272   :  { %v316_v49 = vpop.f32.mrf.mxu0 }
 0x273   :  { %v322_v50 = vmin.f32 %v321_v48, 2.0 }
 0x274   :  { %v426_v51 = vpop.f32.mrf.mxu0 }
 0x275   :  { %v324_v52 = vsel %vm323_vm2, %v314_v46, %v322_v50 }
 0x276   :  { %326 = vst.msk [vmem:[#allocation7] sm:$0xff] %vm325_vm3, %v324_v52 }
 0x277   :  { %502 = shalt.err (!%p499_p0)
}
 0x278   :  { %336 = dma.vmem_to_hbm [thread:$0]  %s334_s1, 128, %s570_s2, [#allocation4]  }
 0x279   :  { %515 = dma.done.wait [#allocation4], 128  }
 0x27a   :  { %516 = vsyncadd [#allocation4], 4294967168 }
 0x27b   :  { %340 = vsyncpa [#allocation3], 1 }
 0x27c   :  { %341 = vsyncpa [#allocation6], 1 }
 0x27d   :  { %342 = vsyncpa [#allocation4], 1 }

</bundles_post_ra>
